<compile_context>
chip_gen: v7x
topology: tpu7x:2x2x1
jax: 0.10.0
libtpu: 0.0.40
codegen_flags: <defaults>
</compile_context>

<pallas_src>
import jax
import jax.numpy as jnp
from jax.experimental import pallas as pl
from jax.experimental.pallas import tpu as pltpu


# ---------------------------------------------------------------------------
# helpers
# ---------------------------------------------------------------------------
def _align_up(v, m):
    return ((v + m - 1) // m) * m


def _sublane_align(dtype):
    """Sublane alignment for a packed dtype: 8 (f32), 16 (bf16), 32 (int8/fp8)."""
    return max(8, 32 // jnp.dtype(dtype).itemsize)


def _pick_tile(padded, target, align):
    """Largest multiple of `align` that divides `padded` and is <= target."""
    q = padded // align
    t = max(1, target // align)
    for d in range(min(q, t), 0, -1):
        if q % d == 0:
            return d * align
    return align


def _vmem_need(tm, tn, tk, comp_bytes, out_bytes):
    """Heuristic VMEM footprint of one pipelined grid step."""
    return (
        2 * (tm * tk + tk * tn) * comp_bytes  # double-buffered x / w tiles
        + 2 * 8 * tn * 4                      # double-buffered bias (pads to 8 sublanes)
        + 2 * tm * tn * out_bytes             # double-buffered output tile
        + tm * tn * 4                         # resident f32 accumulator
    )


def _vmem_capacity_bytes():
    try:
        info = pltpu.get_tpu_info()
        cap = getattr(info, "vmem_capacity_bytes", None)
        if cap:
            return int(cap)
    except Exception:
        pass
    return 64 * 2**20  # conservative: v7x per-TC VMEM


# ---------------------------------------------------------------------------
# kernel
# ---------------------------------------------------------------------------
def _linear_kernel(x_ref, w_ref, b_ref, o_ref, acc_ref):
    """One (i, j, k) grid step of y = x @ w_t + b.

    x_ref:   (tm, tk)  activation tile
    w_ref:   (tk, tn)  pre-transposed weight tile (in_dim, out_dim layout)
    b_ref:   (1,  tn)  f32 bias tile
    o_ref:   (tm, tn)  output tile, written once at the last K step
    acc_ref: (tm, tn)  f32 VMEM accumulator, resident across the K axis
    """
    k = pl.program_id(2)

    @pl.when(k == 0)
    def _init():
        # Fold the bias in at init so the finalize is a pure cast+store.
        acc_ref[...] = jnp.broadcast_to(b_ref[...], acc_ref.shape)

    acc_ref[...] += jnp.dot(
        x_ref[...], w_ref[...], preferred_element_type=jnp.float32
    )

    @pl.when(k == pl.num_programs(2) - 1)
    def _finalize():
        o_ref[...] = acc_ref[...].astype(o_ref.dtype)


# ---------------------------------------------------------------------------
# parameter preparation (one-time HBM cast / transpose / pad)
# ---------------------------------------------------------------------------
def prepare_classifier_params(w, b, *, weight_dtype=jnp.bfloat16):
    """Prepare nn.Linear params once for the Pallas forward.

    w: (out_dim, in_dim)  PyTorch Linear weight layout
    b: (out_dim,)
    Returns a dict with the transposed, padded, cast weight (in_dim_p, out_dim_p),
    the padded f32 bias (1, out_dim_p) and the logical dims.
    """
    out_dim, in_dim = w.shape
    kp = _align_up(in_dim, 128)
    np_ = _align_up(out_dim, 128)
    w_t = jnp.pad(w.astype(weight_dtype).T, ((0, kp - in_dim), (0, np_ - out_dim)))
    b_p = jnp.pad(b.astype(jnp.float32).reshape(1, out_dim), ((0, 0), (0, np_ - out_dim)))
    return {"w_t": w_t, "b": b_p, "in_dim": in_dim, "out_dim": out_dim}


# ---------------------------------------------------------------------------
# forward
# ---------------------------------------------------------------------------
def classifier_forward_prepared(x, params, *, tm=None, tn=None, tk=None):
    """y = x @ w.T + b using pre-prepared (transposed/padded/cast) weights."""
    w_t, b_p = params["w_t"], params["b"]
    in_dim, out_dim = params["in_dim"], params["out_dim"]
    Kp, Np = w_t.shape
    B, in_dim_x = x.shape
    assert in_dim_x == in_dim, "x feature dim must match classifier in_dim"

    out_dtype = x.dtype
    compute_dtype = w_t.dtype
    comp_bytes = jnp.dtype(compute_dtype).itemsize
    out_bytes = jnp.dtype(out_dtype).itemsize

    # Activations: cheap per-call cast + alignment pad (x is small vs the weight).
    m_align = _sublane_align(compute_dtype)
    Bp = _align_up(B, m_align)
    xp = x.astype(compute_dtype)
    if (Bp, Kp) != xp.shape:
        xp = jnp.pad(xp, ((0, Bp - B), (0, Kp - in_dim)))

    # Generation-aware tile targets / VMEM budget.
    vmem_cap = _vmem_capacity_bytes()
    if vmem_cap >= 96 * 2**20:          # v5e / v6e (128 MiB VMEM)
        tm_t, tn_t, tk_t = 512, 2048, 2048
    else:                               # v7x (64 MiB VMEM)
        tm_t, tn_t, tk_t = 512, 2048, 1024
    tm_t = tm if tm is not None else tm_t
    tn_t = tn if tn is not None else tn_t
    tk_t = tk if tk is not None else tk_t

    # Tiles must divide the (alignment-padded) dims: no work wasted on round-up.
    tm_ = _pick_tile(Bp, tm_t, m_align)
    tn_ = _pick_tile(Np, tn_t, 128)
    tk_ = _pick_tile(Kp, tk_t, 128)

    # Shrink to fit the per-chip VMEM budget (headroom for Mosaic scratch).
    headroom = 8 * 2**20
    budget = max(vmem_cap - headroom, 16 * 2**20)
    while _vmem_need(tm_, tn_, tk_, comp_bytes, out_bytes) > budget:
        if tk_ > 128 and tk_ >= tn_:
            tk_ = _pick_tile(Kp, tk_ // 2, 128)
        elif tn_ > 128:
            tn_ = _pick_tile(Np, tn_ // 2, 128)
        elif tk_ > 128:
            tk_ = _pick_tile(Kp, tk_ // 2, 128)
        elif tm_ > m_align:
            tm_ = _pick_tile(Bp, tm_ // 2, m_align)
        else:
            break

    # Megacore: make sure the parallel (M, N) plan has >= 2 blocks when possible,
    # so both v7x TensorCores get work (no effect on v5e/v6e).
    if (Bp // tm_) * (Np // tn_) < 2:
        tn_half = _pick_tile(Np, tn_ // 2, 128)
        tm_half = _pick_tile(Bp, tm_ // 2, m_align)
        if tn_half < tn_ and Np // tn_half >= 2:
            tn_ = tn_half
        elif tm_half < tm_ and Bp // tm_half >= 2:
            tm_ = tm_half

    grid = (Bp // tm_, Np // tn_, Kp // tk_)
    n_m, n_n = grid[0], grid[1]

    need = _vmem_need(tm_, tn_, tk_, comp_bytes, out_bytes)
    vmem_limit = int(min(max(need + 4 * 2**20, 32 * 2**20), budget))
    vmem_limit = max(vmem_limit, need)

    cost = pl.CostEstimate(
        flops=2 * Bp * Kp * Np,
        transcendentals=0,
        bytes_accessed=(
            Bp * Kp * comp_bytes * n_n      # x re-read per N tile
            + Kp * Np * comp_bytes * n_m    # w re-read per M tile
            + Np * 4 * n_m                  # bias re-read per M tile
            + Bp * Np * out_bytes           # output write
        ),
    )

    y = pl.pallas_call(
        _linear_kernel,
        out_shape=jax.ShapeDtypeStruct((Bp, Np), out_dtype),
        grid_spec=pltpu.PrefetchScalarGridSpec(
            num_scalar_prefetch=0,
            grid=grid,
            in_specs=[
                pl.BlockSpec((tm_, tk_), lambda i, j, k: (i, k)),  # x
                pl.BlockSpec((tk_, tn_), lambda i, j, k: (k, j)),  # w_t (in, out)
                pl.BlockSpec((1, tn_), lambda i, j, k: (0, j)),    # bias
            ],
            out_specs=pl.BlockSpec((tm_, tn_), lambda i, j, k: (i, j)),
            scratch_shapes=[pltpu.VMEM((tm_, tn_), jnp.float32)],
        ),
        compiler_params=pltpu.CompilerParams(
            dimension_semantics=("parallel", "parallel", "arbitrary"),
            vmem_limit_bytes=vmem_limit,
        ),
        cost_estimate=cost,
    )(xp, w_t, b_p)

    if Bp == B and Np == out_dim:
        return y
    return y[:B, :out_dim]


def classifier_forward(x, w, b, *, weight_dtype=jnp.bfloat16, tm=None, tn=None, tk=None):
    """Convenience wrapper: preps (cast/transpose/pad) the weight and runs the kernel.

    For repeated calls with the same parameters, call prepare_classifier_params
    once and use classifier_forward_prepared to avoid re-streaming the weight
    through HBM every forward.
    """
    params = prepare_classifier_params(w, b, weight_dtype=weight_dtype)
    return classifier_forward_prepared(x, params, tm=tm, tn=tn, tk=tk)


def init_classifier_params(key, in_dim, out_dim):
    """Deterministic xavier_normal_ weight init + zero bias (mirrors xavier_init)."""
    std = (2.0 / (in_dim + out_dim)) ** 0.5
    w = std * jax.random.normal(key, (out_dim, in_dim), dtype=jnp.float32)
    b = jnp.zeros((out_dim,), dtype=jnp.float32)
    return w, b


if __name__ == "__main__":
    key = jax.random.PRNGKey(0)
    k_w, k_x = jax.random.split(key)

    batch, in_dim, out_dim = 8, 32, 16
    w, b = init_classifier_params(k_w, in_dim, out_dim)
    x = jax.random.normal(k_x, (batch, in_dim), dtype=jnp.float32)
    y_ref = x @ w.T + b

    # 1) f32 weight path: exact nn.Linear semantics.
    params_f32 = prepare_classifier_params(w, b, weight_dtype=jnp.float32)
    y = classifier_forward_prepared(x, params_f32)
    jax.block_until_ready(y)
    assert y.shape == (batch, out_dim)
    assert jnp.allclose(y, y_ref, atol=1e-5, rtol=1e-5)

    # 2) default bf16 streamed weight (performance default), f32 accumulation.
    params_bf16 = prepare_classifier_params(w, b)
    y_bf16 = classifier_forward_prepared(x, params_bf16)
    jax.block_until_ready(y_bf16)
    assert jnp.allclose(y_bf16, y_ref, atol=5e-2, rtol=5e-2)

    # 3) Odd shapes with small tile targets: exercises alignment-only padding,
    #    multi-tile M/N, multi-step K accumulation and the bias-at-init path.
    k_w2, k_x2 = jax.random.split(k_w)
    B2, D2, C2 = 16, 300, 200
    w2, b2 = init_classifier_params(k_w2, D2, C2)
    b2 = b2 + 0.5  # nonzero bias to catch bias-handling bugs
    x2 = jax.random.normal(k_x2, (B2, D2), dtype=jnp.float32)
    params2 = prepare_classifier_params(w2, b2, weight_dtype=jnp.float32)
    y2 = classifier_forward_prepared(x2, params2, tm=8, tn=128, tk=128)
    jax.block_until_ready(y2)
    y2_ref = x2 @ w2.T + b2
    assert y2.shape == (B2, C2)
    assert jnp.allclose(y2, y2_ref, atol=1e-3, rtol=1e-3)

    # 4) Convenience one-shot wrapper.
    y3 = classifier_forward(x, w, b, weight_dtype=jnp.float32)
    jax.block_until_ready(y3)
    assert jnp.allclose(y3, y_ref, atol=1e-5, rtol=1e-5)

    print("KERNEL_OK")
</pallas_src>

<mosaic_0001>
module attributes {stable_mosaic.version = 11 : i64} {
  func.func @_linear_kernel(%arg0: i32, %arg1: i32, %arg2: i32, %arg3: memref<8x128xf32, #tpu.memory_space<vmem>>, %arg4: memref<128x128xf32, #tpu.memory_space<vmem>>, %arg5: memref<1x128xf32, #tpu.memory_space<vmem>>, %arg6: memref<8x128xf32, #tpu.memory_space<vmem>>, %arg7: memref<8x128xf32, #tpu.memory_space<vmem>>) attributes {dimension_semantics = [#tpu.dimension_semantics<parallel>, #tpu.dimension_semantics<parallel>, #tpu.dimension_semantics<arbitrary>], iteration_bounds = array<i64: 1, 1, 1>, scalar_prefetch = 0 : i64, scratch_operands = 1 : i64, tpu.core_type = #tpu.core_type<tc>, window_params = [{transform_indices = @transform_0, window_bounds = array<i64: 8, 128>}, {transform_indices = @transform_1, window_bounds = array<i64: 128, 128>}, {transform_indices = @transform_2, window_bounds = array<i64: 1, 128>}, {transform_indices = @transform_3, window_bounds = array<i64: 8, 128>}]} {
    %c0_i32 = arith.constant 0 : i32
    %0 = arith.cmpi eq, %arg2, %c0_i32 : i32
    %1 = arith.extui %0 : i1 to i32
    %c0_i32_0 = arith.constant 0 : i32
    %2 = arith.cmpi ne, %1, %c0_i32_0 : i32
    scf.if %2 {
      %c0_10 = arith.constant 0 : index
      %c0_11 = arith.constant 0 : index
      %12 = vector.load %arg5[%c0_10, %c0_11] : memref<1x128xf32, #tpu.memory_space<vmem>>, vector<1x128xf32>
      %13 = vector.shape_cast %12 : vector<1x128xf32> to vector<1x128xf32>
      %14 = vector.broadcast %13 : vector<1x128xf32> to vector<8x128xf32>
      %c0_12 = arith.constant 0 : index
      %c0_13 = arith.constant 0 : index
      %15 = vector.load %arg7[%c0_12, %c0_13] : memref<8x128xf32, #tpu.memory_space<vmem>>, vector<8x128xf32>
      tpu.vector_store %arg7[%c0_12, %c0_13], %14 {strides = array<i32>} : memref<8x128xf32, #tpu.memory_space<vmem>>, vector<8x128xf32>,
    } else {
    }
    %c0 = arith.constant 0 : index
    %c0_1 = arith.constant 0 : index
    %3 = vector.load %arg7[%c0, %c0_1] : memref<8x128xf32, #tpu.memory_space<vmem>>, vector<8x128xf32>
    %c0_2 = arith.constant 0 : index
    %c0_3 = arith.constant 0 : index
    %4 = vector.load %arg3[%c0_2, %c0_3] : memref<8x128xf32, #tpu.memory_space<vmem>>, vector<8x128xf32>
    %c0_4 = arith.constant 0 : index
    %c0_5 = arith.constant 0 : index
    %5 = vector.load %arg4[%c0_4, %c0_5] : memref<128x128xf32, #tpu.memory_space<vmem>>, vector<128x128xf32>
    %cst = arith.constant dense<0.000000e+00> : vector<8x128xf32>
    %6 = tpu.matmul %4, %5, %cst {dimension_numbers = #tpu.dot_dimension_numbers<[1], [0], [0], [1], [0, 0, 1, 1], [], []>} : vector<8x128xf32>, vector<128x128xf32>, vector<8x128xf32> -> vector<8x128xf32>
    %7 = arith.addf %3, %6 : vector<8x128xf32>
    %c0_6 = arith.constant 0 : index
    %c0_7 = arith.constant 0 : index
    %8 = vector.load %arg7[%c0_6, %c0_7] : memref<8x128xf32, #tpu.memory_space<vmem>>, vector<8x128xf32>
    tpu.vector_store %arg7[%c0_6, %c0_7], %7 {strides = array<i32>} : memref<8x128xf32, #tpu.memory_space<vmem>>, vector<8x128xf32>,
    %c0_i32_8 = arith.constant 0 : i32
    %9 = arith.cmpi eq, %arg2, %c0_i32_8 : i32
    %10 = arith.extui %9 : i1 to i32
    %c0_i32_9 = arith.constant 0 : i32
    %11 = arith.cmpi ne, %10, %c0_i32_9 : i32
    scf.if %11 {
      %c0_10 = arith.constant 0 : index
      %c0_11 = arith.constant 0 : index
      %12 = vector.load %arg7[%c0_10, %c0_11] : memref<8x128xf32, #tpu.memory_space<vmem>>, vector<8x128xf32>
      %c0_12 = arith.constant 0 : index
      %c0_13 = arith.constant 0 : index
      %13 = vector.load %arg6[%c0_12, %c0_13] : memref<8x128xf32, #tpu.memory_space<vmem>>, vector<8x128xf32>
      tpu.vector_store %arg6[%c0_12, %c0_13], %12 {strides = array<i32>} : memref<8x128xf32, #tpu.memory_space<vmem>>, vector<8x128xf32>,
    } else {
    }
    return
  }
  func.func @transform_0(%arg0: i32, %arg1: i32, %arg2: i32) -> (i32, i32) {
    %c0_i32 = arith.constant 0 : i32
    return %arg0, %arg2 : i32, i32
  }
  func.func @transform_1(%arg0: i32, %arg1: i32, %arg2: i32) -> (i32, i32) {
    %c0_i32 = arith.constant 0 : i32
    return %arg2, %arg1 : i32, i32
  }
  func.func @transform_2(%arg0: i32, %arg1: i32, %arg2: i32) -> (i32, i32) {
    %c0_i32 = arith.constant 0 : i32
    %c0_i32_0 = arith.constant 0 : i32
    return %c0_i32, %arg1 : i32, i32
  }
  func.func @transform_3(%arg0: i32, %arg1: i32, %arg2: i32) -> (i32, i32) {
    %c0_i32 = arith.constant 0 : i32
    return %arg0, %arg1 : i32, i32
  }
}

</mosaic_0001>

<bundles_post_ra>
// kernel: tpu_custom_call.1
= control target key start
LH: loop header
LB: loop body
LE: loop exit
PB: predicated region body
PF: predicated region fallthrough
CT: control target
= control target key end

     0   :  { %8 = vsyncpa [#allocation4], 0  ;;  %s395_s0 = inlined_call_operand.hbm [shape: f32[8,128], index: 0, kind: input, shape index: {}]   ;;  %s396_s1 = inlined_call_operand.hbm [shape: f32[128,128], index: 1, kind: input, shape index: {}]   ;;  %s397_s2 = inlined_call_operand.vmem [shape: f32[1,128], index: 2, kind: input, shape index: {}]   ;;  %s398_s3 = inlined_call_operand.hbm [shape: f32[8,128], index: 3, kind: output, shape index: {}]  }
   0x1   :  { %9 = vsyncpa [#allocation7], 0 }
   0x2   :  { %10 = vsyncpa [#allocation5], 0  ;;  %s321_s12 = smov [#allocation3]   ;;  %s322_s14 = smov [#allocation6]  }
   0x3   :  { %s17_s13 = sshll.u32 %s321_s12, 4  ;;  %s26_s15 = sshll.u32 %s322_s14, 4  ;;  %s18_s13 = int_to_ptr.vmem [resolvable:$true] %s17_s13  ;;  %s349_s15 = int_to_ptr.vmem [resolvable:$true] %s26_s15 }
   0x4   :  { %s249_s18 = scalar_lea.hbm %s395_s0, 128 }
   0x5   :  { %p250_p0 = scmp.ne.s32.totalorder %s395_s0, %s249_s18  ;;  %p253_p1 = scmp.lt.u32.totalorder %s249_s18, %s395_s0 }
   0x7   :  { %p255_p2 = pnand %p253_p1, %p250_p0 }
   0x9   :  { %258 = shalt.err (!%p255_p2)
}
   0xa   :  { %s259_s23 = scalar_lea.vmem %s18_s13, 128  ;;  %p264_p4 = scmp.lt.s32.totalorder %s18_s13, %s18_s13 }
   0xb   :  { %p260_p3 = scmp.ne.s32.totalorder %s18_s13, %s259_s23  ;;  %p265_p5 = scmp.lt.s32.totalorder %s259_s23, %s259_s23 }
   0xd   :  { %p266_p6 = por %p265_p5, %p264_p4 }
   0xf   :  { %p267_p7 = pnand %p266_p6, %p260_p3 }
  0x11   :  { %270 = shalt.err (!%p267_p7)
}
  0x12   :  { %20 = dma.hbm_to_vmem [thread:$0]  %s395_s0, 128, %s18_s13, [#allocation4]  }
  0x13   :  { %s271_s28 = scalar_lea.hbm %s396_s1, 2048 }
  0x14   :  { %p272_p8 = scmp.ne.s32.totalorder %s396_s1, %s271_s28  ;;  %p275_p9 = scmp.lt.u32.totalorder %s271_s28, %s396_s1 }
  0x16   :  { %p277_p10 = pnand %p275_p9, %p272_p8 }
  0x18   :  { %280 = shalt.err (!%p277_p10)
}
  0x19   :  { %s281_s6 = scalar_lea.vmem %s349_s15, 2048  ;;  %p286_p12 = scmp.lt.s32.totalorder %s349_s15, %s349_s15 }
  0x1a   :  { %p282_p11 = scmp.ne.s32.totalorder %s349_s15, %s281_s6  ;;  %p287_p13 = scmp.lt.s32.totalorder %s281_s6, %s281_s6 }
  0x1c   :  { %p288_p0 = por %p287_p13, %p286_p12 }
  0x1e   :  { %p289_p1 = pnand %p288_p0, %p282_p11 }
  0x20   :  { %292 = shalt.err (!%p289_p1)
}
  0x21   :  { %s323_s0 = smov 128   ;;  %s324_s7 = smov 8  }
  0x22   :  { %32 = dma.hbm_to_vmem [thread:$0]  %s396_s1, 2048, %s349_s15, [#allocation7], %s323_s0, %s323_s0, %s324_s7  }
  0x23   :  { %315 = dma.done.wait [#allocation4], 128  }
  0x24   :  { %316 = vsyncadd [#allocation4], 4294967168 }
  0x25   :  { %317 = dma.done.wait [#allocation7], 2048  }
  0x26   :  { %318 = vsyncadd [#allocation7], 4294965248  ;;  %v325_v0 = vmov 0.0|0.0   ;;  %vm326_vm0 = vmmov 0   ;;  %v327_v1 = vmov 0.0   ;;  %v55_v2 = vld [vmem:[#allocation6] sm:$0xff] }
  0x27   :  { %217 = vmatprep.subr.bf16.mxu0 %v325_v0  ;;  %214 = vmatprep.mubr.msk.f32.mxu0 %vm326_vm0, %v327_v1  ;;  %v56_v3 = vld [vmem:[#allocation6 + $0x8] sm:$0xff]  ;;  %v57_v4 = vld [vmem:[#allocation6 + $0x10] sm:$0xff]  ;;  %v58_v6 = vld [vmem:[#allocation6 + $0x18] sm:$0xff]  ;;  %s328_s11 = smov [#allocation8]  }
  0x28   :  { %v218_v5 = vpack.c.bf16 %v56_v3, %v55_v2  ;;  %v221_v7 = vpack.c.bf16 %v58_v6, %v57_v4  ;;  %v59_v8 = vld [vmem:[#allocation6 + $0x20] sm:$0xff]  ;;  %v60_v9 = vld [vmem:[#allocation6 + $0x28] sm:$0xff]  ;;  %v61_v11 = vld [vmem:[#allocation6 + $0x30] sm:$0xff]  ;;  %s154_s12 = sshll.u32 %s328_s11, 4  ;;  %s155_s12 = int_to_ptr.vmem [resolvable:$true] %s154_s12 }
  0x29   :  { %v224_v10 = vpack.c.bf16 %v60_v9, %v59_v8  ;;  %v62_v12 = vld [vmem:[#allocation6 + $0x38] sm:$0xff]  ;;  %v63_v14 = vld [vmem:[#allocation6 + $0x40] sm:$0xff]  ;;  %v64_v15 = vld [vmem:[#allocation6 + $0x48] sm:$0xff]  ;;  %s293_s13 = scalar_lea.vmem %s155_s12, 128  ;;  %p298_p3 = scmp.lt.s32.totalorder %s155_s12, %s155_s12 }
  0x2a   :  { %219 = vmatpush3.bf16.msra.mxu0 %v218_v5  ;;  %v227_v13 = vpack.c.bf16 %v62_v12, %v61_v11  ;;  %v230_v16 = vpack.c.bf16 %v64_v15, %v63_v14  ;;  %v65_v17 = vld [vmem:[#allocation6 + $0x50] sm:$0xff]  ;;  %v66_v18 = vld [vmem:[#allocation6 + $0x58] sm:$0xff]  ;;  %v67_v20 = vld [vmem:[#allocation6 + $0x60] sm:$0xff]  ;;  %p294_p2 = scmp.ne.s32.totalorder %s155_s12, %s293_s13  ;;  %p299_p4 = scmp.lt.s32.totalorder %s293_s13, %s293_s13 }
  0x2b   :  { %220 = vmatprep.subr.bf16.mxu0 %v325_v0  ;;  %v233_v19 = vpack.c.bf16 %v66_v18, %v65_v17  ;;  %v68_v21 = vld [vmem:[#allocation6 + $0x68] sm:$0xff]  ;;  %v69_v23 = vld [vmem:[#allocation6 + $0x70] sm:$0xff]  ;;  %v70_v24 = vld [vmem:[#allocation6 + $0x78] sm:$0xff] }
  0x2c   :  { %v236_v22 = vpack.c.bf16 %v68_v21, %v67_v20  ;;  %v239_v25 = vpack.c.bf16 %v70_v24, %v69_v23  ;;  %v54_v26 = vld [vmem:[#allocation3] sm:$0xff]  ;;  %p300_p5 = por %p299_p4, %p298_p3 }
  0x2d   :  { %v164_v27 = vld [vmem:[%s397_s2] ss:$0 sm:$0xff] }
  0x2e   :  { %222 = vmatpush3.bf16.msra.mxu0 %v221_v7  ;;  %p301_p6 = pnand %p300_p5, %p294_p2 }
  0x2f   :  { %223 = vmatprep.subr.bf16.mxu0 %v325_v0 }
  0x32   :  { %225 = vmatpush3.bf16.msra.mxu0 %v224_v10 }
  0x33   :  { %226 = vmatprep.subr.bf16.mxu0 %v325_v0 }
  0x36   :  { %228 = vmatpush3.bf16.msra.mxu0 %v227_v13 }
  0x37   :  { %229 = vmatprep.subr.bf16.mxu0 %v325_v0 }
  0x3a   :  { %231 = vmatpush3.bf16.msra.mxu0 %v230_v16 }
  0x3b   :  { %232 = vmatprep.subr.bf16.mxu0 %v325_v0 }
  0x3e   :  { %234 = vmatpush3.bf16.msra.mxu0 %v233_v19 }
  0x3f   :  { %235 = vmatprep.subr.bf16.mxu0 %v325_v0 }
  0x42   :  { %237 = vmatpush3.bf16.msra.mxu0 %v236_v22 }
  0x43   :  { %238 = vmatprep.subr.bf16.mxu0 %v325_v0 }
  0x46   :  { %240 = vmatpush3.bf16.msra.mxu0 %v239_v25 }
  0x49   :  { %215 = vmatmul.mubr.f32.vlgmr.msra.gmra.mrb[0].mxu0 %v54_v26 }
 0x11c   :  { %v137_v28 = vpop.f32.mrb[0].mxu0 }
 0x11d   :  { %v141_v29 = vadd.f32 %v164_v27, %v137_v28  ;;  %v216_v30 = vpop.f32.mrb[1].mxu0 }
 0x11f   :  { %147 = vst [vmem:[#allocation8] sm:$0xff] %v141_v29 }
 0x120   :  { %304 = shalt.err (!%p301_p6)
}
 0x121   :  { %s305_s16 = scalar_lea.hbm %s398_s3, 128 }
 0x122   :  { %p306_p7 = scmp.ne.s32.totalorder %s398_s3, %s305_s16  ;;  %p309_p8 = scmp.lt.u32.totalorder %s305_s16, %s398_s3 }
 0x124   :  { %p311_p9 = pnand %p309_p8, %p306_p7 }
 0x126   :  { %314 = shalt.err (!%p311_p9)
}
 0x127   :  { %157 = dma.vmem_to_hbm [thread:$0]  %s155_s12, 128, %s398_s3, [#allocation5]  }
 0x128   :  { %319 = dma.done.wait [#allocation5], 128  }
 0x129   :  { %320 = vsyncadd [#allocation5], 4294967168 }
 0x12a   :  { %161 = vsyncpa [#allocation4], 1 }
 0x12b   :  { %162 = vsyncpa [#allocation7], 1 }
 0x12c   :  { %163 = vsyncpa [#allocation5], 1 }

</bundles_post_ra>
